<compile_context>
chip_gen: v7x
topology: tpu7x:2x2x1
jax: 0.10.0
libtpu: 0.0.40
codegen_flags: <defaults>
</compile_context>

<pallas_src>
import jax
import jax.numpy as jnp
from jax.experimental import pallas as pl
from jax.experimental.pallas import tpu as pltpu

_LANE = 128
_SUBLANE = 8


def poly_kernel(params_ref, x_ref, o_ref):
    # params_ref: scalar-prefetch SMEM ref holding [a, b, c] in float32.
    a = params_ref[0]
    b = params_ref[1]
    c = params_ref[2]
    x = x_ref[...].astype(jnp.float32)
    # Horner form: ((a*x + b)*x + c) -- one fewer VALU multiply per vreg.
    o_ref[...] = ((a * x + b) * x + c).astype(o_ref.dtype)


def _round_up(v, m):
    return (v + m - 1) // m * m


def polynomial_net(x, a, b, c, *, target_block_bytes=2 * 1024 * 1024):
    """Apply y = a*x**2 + b*x + c elementwise via a tiled Pallas TPU kernel."""
    orig_shape = x.shape
    orig_dtype = x.dtype
    dtype_size = jnp.dtype(orig_dtype).itemsize
    total = int(x.size)

    # Sublane packing: f32 -> 8, bf16 -> 16, int8/fp8 -> 32.
    sub = _SUBLANE * max(1, 4 // dtype_size)

    # ---- Layout plumbing: lane-dense 2-D slab [rows, lane_n] ----------------
    lane_n = _LANE
    for cand in (1024, 512, 256, 128):
        if total >= cand * sub:
            lane_n = cand
            break

    padded = _round_up(max(total, 1), lane_n * sub)
    x_flat = x.reshape(-1)
    if padded != total:
        x_flat = jnp.pad(x_flat, (0, padded - total))
    rows = padded // lane_n
    x2d = x_flat.reshape(rows, lane_n)

    # ---- Block sizing: ~target_block_bytes per block, multiple of sublanes --
    row_bytes = lane_n * dtype_size
    tile_m = max(sub, min(target_block_bytes // row_bytes, rows))
    tile_m = max(sub, (tile_m // sub) * sub)
    # Prefer >= 2 grid steps so the "parallel" axis can shard across v7x's 2 TCs.
    while pl.cdiv(rows, tile_m) < 2 and tile_m >= 2 * sub:
        tile_m = max(sub, ((tile_m // 2) // sub) * sub)

    grid = (pl.cdiv(rows, tile_m),)

    params = jnp.stack([a, b, c]).astype(jnp.float32)

    out2d = pl.pallas_call(
        poly_kernel,
        out_shape=jax.ShapeDtypeStruct((rows, lane_n), orig_dtype),
        grid_spec=pltpu.PrefetchScalarGridSpec(
            num_scalar_prefetch=1,  # params -> SMEM once, before the grid runs
            grid=grid,
            in_specs=[pl.BlockSpec((tile_m, lane_n), lambda i, p: (i, 0))],
            out_specs=pl.BlockSpec((tile_m, lane_n), lambda i, p: (i, 0)),
        ),
        compiler_params=pltpu.CompilerParams(
            dimension_semantics=("parallel",),
            vmem_limit_bytes=32 * 1024 * 1024,  # > v5e's 16 MiB default, safe on v7x
        ),
        cost_estimate=pl.CostEstimate(
            flops=3 * total,
            transcendentals=0,
            bytes_accessed=2 * total * dtype_size,
        ),
    )(params, x2d)

    out_flat = out2d.reshape(-1)
    if padded != total:
        out_flat = out_flat[:total]
    return out_flat.reshape(orig_shape)


if __name__ == "__main__":
    key = jax.random.PRNGKey(0)
    kx1, kx2, ka, kb, kc = jax.random.split(key, 5)

    # Deterministic scalar "parameters" (module __init__ draws scalar randn()'s)
    a = jax.random.normal(ka, (), dtype=jnp.float32)
    b = jax.random.normal(kb, (), dtype=jnp.float32)
    c = jax.random.normal(kc, (), dtype=jnp.float32)

    # Small example inputs (elementwise module works on any shape);
    # second one has a ragged last dim to exercise the lane-dense repack path.
    x1 = jax.random.normal(kx1, (256, 256), dtype=jnp.float32)
    x2 = jax.random.normal(kx2, (3, 37, 50), dtype=jnp.float32)

    for x in (x1, x2):
        y = polynomial_net(x, a, b, c)
        jax.block_until_ready(y)
        y_ref = a * x ** 2 + b * x + c
        assert y.shape == x.shape and y.dtype == x.dtype
        assert jnp.allclose(y, y_ref, atol=1e-5, rtol=1e-5)

    print("KERNEL_OK")
</pallas_src>

<mosaic_0001>
module attributes {stable_mosaic.version = 11 : i64} {
  func.func @poly_kernel(%arg0: i32, %arg1: memref<3xf32, #tpu.memory_space<smem>>, %arg2: memref<32x1024xf32, #tpu.memory_space<vmem>>, %arg3: memref<32x1024xf32, #tpu.memory_space<vmem>>) attributes {dimension_semantics = [#tpu.dimension_semantics<parallel>], iteration_bounds = array<i64: 2>, scalar_prefetch = 1 : i64, scratch_operands = 0 : i64, tpu.core_type = #tpu.core_type<tc>, window_params = [{transform_indices = @transform_0, window_bounds = array<i64: 32, 1024>}, {transform_indices = @transform_1, window_bounds = array<i64: 32, 1024>}]} {
    %c0 = arith.constant 0 : index
    %0 = memref.load %arg1[%c0] : memref<3xf32, #tpu.memory_space<smem>>
    %c1 = arith.constant 1 : index
    %1 = memref.load %arg1[%c1] : memref<3xf32, #tpu.memory_space<smem>>
    %c2 = arith.constant 2 : index
    %2 = memref.load %arg1[%c2] : memref<3xf32, #tpu.memory_space<smem>>
    %c0_0 = arith.constant 0 : index
    %c0_1 = arith.constant 0 : index
    %3 = vector.load %arg2[%c0_0, %c0_1] : memref<32x1024xf32, #tpu.memory_space<vmem>>, vector<32x1024xf32>
    %4 = vector.broadcast %0 : f32 to vector<32x1024xf32>
    %5 = arith.mulf %4, %3 : vector<32x1024xf32>
    %6 = vector.broadcast %1 : f32 to vector<32x1024xf32>
    %7 = arith.addf %5, %6 : vector<32x1024xf32>
    %8 = arith.mulf %7, %3 : vector<32x1024xf32>
    %9 = vector.broadcast %2 : f32 to vector<32x1024xf32>
    %10 = arith.addf %8, %9 : vector<32x1024xf32>
    %c0_2 = arith.constant 0 : index
    %c0_3 = arith.constant 0 : index
    %11 = vector.load %arg3[%c0_2, %c0_3] : memref<32x1024xf32, #tpu.memory_space<vmem>>, vector<32x1024xf32>
    tpu.vector_store %arg3[%c0_2, %c0_3], %10 {strides = array<i32>} : memref<32x1024xf32, #tpu.memory_space<vmem>>, vector<32x1024xf32>,
    return
  }
  func.func @transform_0(%arg0: i32, %arg1: memref<3xf32, #tpu.memory_space<smem>>) -> (i32, i32) {
    %c0_i32 = arith.constant 0 : i32
    %c0_i32_0 = arith.constant 0 : i32
    return %arg0, %c0_i32 : i32, i32
  }
  func.func @transform_1(%arg0: i32, %arg1: memref<3xf32, #tpu.memory_space<smem>>) -> (i32, i32) {
    %c0_i32 = arith.constant 0 : i32
    %c0_i32_0 = arith.constant 0 : i32
    return %arg0, %c0_i32 : i32, i32
  }
}

</mosaic_0001>

<bundles_post_ra>
// kernel: tpu_custom_call.1
= control target key start
LH: loop header
LB: loop body
LE: loop exit
PB: predicated region body
PF: predicated region fallthrough
CT: control target
= control target key end

     0   :  { %s983_s0 = inlined_call_operand.hbm [shape: f32[3], index: 0, kind: input, shape index: {}]   ;;  %s984_s1 = inlined_call_operand.hbm [shape: f32[64,1024], index: 1, kind: input, shape index: {}]   ;;  %s985_s2 = inlined_call_operand.hbm [shape: f32[64,1024], index: 2, kind: output, shape index: {}]  }
   0x1   :  { %s502_s11 = scalar_lea.hbm %s983_s0, 16 }
   0x2   :  { %p503_p0 = scmp.ne.s32.totalorder %s983_s0, %s502_s11  ;;  %p506_p1 = scmp.lt.u32.totalorder %s502_s11, %s983_s0 }
   0x4   :  { %p508_p2 = pnand %p506_p1, %p503_p0 }
   0x6   :  { %511 = shalt.err (!%p508_p2)  }
   0x7   :  { %s612_s16 = smov [#allocation3]  }
   0x8   :  { %8 = dma.hbm_to_smem %s983_s0, 16, %s612_s16, [#allocation2] }
   0x9   :  { %586 = dma.done.wait [#allocation2], 16 }
   0xa   :  { %587 = vsyncadd [#allocation2], 4294967280 }
   0xb   :  { %10 = sfence }
   0xc   :  { %11 = vsyncpa [#allocation5], 0 }
   0xd   :  { %13 = vsyncpa [#allocation5 + $0x1], 0 }
   0xe   :  { %14 = vsyncpa [#allocation6], 0 }
   0xf   :  { %16 = vsyncpa [#allocation6 + $0x1], 0  ;;  %s646_s19 = smov 0   ;;  %s648_s20 = smov 0  }
  0x10   :  { %s650_s21 = smov 0   ;;  %s652_s22 = smov 0  }
  0x11 LB: > { %s667_s0 = sadd.s32 4294967295, %s610_s22   ;;  %s429_s23 = sadd.s32 4294967294, %s610_s22   ;;  %s610_s22 = sphi %s652_s22, %s998_s22   ;;  %s606_s21 = sphi %s650_s21, %s997_s21   ;;  %s602_s20 = sphi %s648_s20, %s996_s20   ;;  %s598_s19 = sphi %s646_s19, %s995_s19  }
  0x12   : > { %s671_s24 = sadd.s32 1, %s610_s22   ;;  %s29_s25 = sadd.s32 1, %s606_s21 }
  0x13   : > { %s26_s26 = ssub.s32 %s610_s22, %s671_s24  ;;  %p36_p3 = scmp.ne.s32.totalorder %s606_s21, %s602_s20 }
  0x14   : > { %p27_p4 = scmp.eq.s32.totalorder %s26_s26, 0  ;;  %p37_p5 = scmp.eq.s32.totalorder %s610_s22, 0 }
  0x15   : > { %p42_p6 = scmp.ne.s32.totalorder %s602_s20, %s598_s19  ;;  %p43_p7 = scmp.eq.s32.totalorder %s667_s0, 0 }
  0x16   : > { %s683_s27 = scalar_select %p27_p4, %s606_s21, %s29_s25  }
  0x17   : > { %p685_p8 = por %p37_p5, %p36_p3  ;;  %p689_p9 = por %p43_p7, %p42_p6 }
  0x18   : > { %p66_p10 = scmp.eq.s32.totalorder %s667_s0, 1  ;;  %p72_p11 = scmp.eq.s32.totalorder %s429_s23, 1 }
  0x19   : > { %p463_p13 = scmp.lt.s32.totalorder %s610_s22, 2  ;;  %s92_s4 = sand.u32 1, %s606_s21  }
  0x1a   : > { %p696_p0 = por %p66_p10, %p36_p3  ;;  %p700_p1 = por %p72_p11, %p42_p6 }
  0x1b   : > { %s448_s5 = sshll.u32 %s610_s22, 12  ;;  %s432_s6 = sshll.u32 %s92_s4, 8 }
  0x1c   : > { %s989_s30 = scalar_select %p696_p0, 1, 0 }
  0x1d   : > { %s990_s3 = scalar_select %p700_p1, 1, 0 }
  0x1e   : > { %s709_s9 = scalar_lea.hbm %s984_s1, %s448_s5  ;;  %s96_s10 = scalar_lea.vmem [#allocation4], %s432_s6 }
  0x1f   : > { %s104_s11 = sshll.u32 %s96_s10, 4  ;;  %p713_p2 = pnand %p463_p13, %p685_p8  ;;  %s717_s11 = int_to_ptr.vmem [resolvable:$true] %s104_s11 }
  0x20   : > { %s719_s13 = scalar_lea.sflag [#allocation5], %s92_s4  ;;  %s512_s14 = scalar_lea.hbm %s709_s9, 4096 }
  0x21   : > { %p513_p3 = scmp.ne.s32.totalorder %s709_s9, %s512_s14  ;;  %p514_p4 = pneg %p713_p2 }
  0x22   : > { %s517_s17 = scalar_lea.hbm %s984_s1, 8192  ;;  %p518_p7 = scmp.lt.u32.totalorder %s709_s9, %s984_s1 }
  0x23   : > { %p515_p5 = pnand %p514_p4, %p513_p3  ;;  %p519_p8 = scmp.lt.u32.totalorder %s517_s17, %s512_s14 }
  0x24   : > { %p521_p11 = scmp.lt.u32.totalorder %s512_s14, %s709_s9 }
  0x25   : > { %p516_p6 = pneg %p515_p5  ;;  %p520_p10 = por %p519_p8, %p518_p7 }
  0x27   : > { %p522_p13 = por %p521_p11, %p520_p10 }
  0x29   : > { %p523_p12 = pnand %p522_p13, %p516_p6 }
  0x2b   : > { %526 = shalt.err (!%p523_p12)
}
  0x2c   : > { %s527_s25 = scalar_lea.vmem %s717_s11, 4096  ;;  %s613_s26 = smov [#allocation4]  }
  0x2d   : > { %p528_p3 = scmp.ne.s32.totalorder %s717_s11, %s527_s25  ;;  %s532_s28 = sshll.u32 %s613_s26, 4  ;;  %s533_s28 = int_to_ptr.vmem [resolvable:$false] %s532_s28 }
  0x2e   : > { %s534_s4 = scalar_lea.vmem %s533_s28, 8192  ;;  %p535_p0 = scmp.lt.s32.totalorder %s717_s11, %s533_s28 }
  0x2f   : > { %p530_p5 = pnand %p528_p3, %p514_p4  ;;  %p536_p7 = scmp.lt.s32.totalorder %s534_s4, %s527_s25 }
  0x31   : > { %p531_p1 = pneg %p530_p5  ;;  %p537_p8 = por %p536_p7, %p535_p0 }
  0x33   : > { %p538_p10 = pnand %p537_p8, %p531_p1 }
  0x35   : > { %541 = shalt.err (!%p538_p10)
}
  0x36   : > { %s614_s5 = smov 1024   ;;  %s615_s6 = smov 64  }
  0x37   : > { %458 = dma.hbm_to_vmem [thread:$0]  (!%p713_p2), %s709_s9, 4096, %s717_s11, %s719_s13, %s614_s5, %s614_s5, %s615_s6  }
  0x38   : > { %p436_p12 = scmp.ge.s32.totalorder %s610_s22, 1  ;;  %p112_p4 = scmp.lt.s32.totalorder %s610_s22, 3 }
  0x3a   : > { %p113_p6 = pnand %p436_p12, %p112_p4 }
  0x3b   : > { %s750_s7 = sand.u32 (!%p113_p6), 1, %s602_s20  }
  0x3c   : > { %116 = sbr.rel (%p113_p6) target bundleno = 127 (0x7f), region = 24  ;;  %s437_s8 = sshll.u32 (!%p113_p6), %s750_s7, 8 }
  0x3d   : > { %s119_s10 = scalar_lea.sflag (!%p113_p6), [#allocation5], %s750_s7  ;;  %s756_s14 = scalar_lea.vmem (!%p113_p6), [#allocation4], %s437_s8 }
  0x43   : > { %589 = dma.done.wait (%p689_p9), %s119_s10, 4096  }
  0x44   : > { %591 = vsyncadd (%p689_p9), %s119_s10, 4294963200  ;;  %s143_s9 = sld [smem:[#allocation3]]  ;;  %s439_s11 = sld [smem:[#allocation3 + $0x1]]  ;;  %v146_v0 = vld [vmem:[%s756_s14] sm:$0xff]  ;;  %v147_v3 = vld [vmem:[%s756_s14 + $0x8] sm:$0xff] }
  0x45   : > { %s440_s12 = sld [smem:[#allocation3 + $0x2]]  ;;  %v148_v6 = vld [vmem:[%s756_s14 + $0x10] sm:$0xff]  ;;  %v149_v7 = vld [vmem:[%s756_s14 + $0x18] sm:$0xff]  ;;  %v150_v8 = vld [vmem:[%s756_s14 + $0x20] sm:$0xff]  ;;  %s806_s29 = scalar_lea.vmem [#allocation7], %s437_s8 }
  0x46   : > { %v151_v13 = vld [vmem:[%s756_s14 + $0x28] sm:$0xff]  ;;  %v152_v14 = vld [vmem:[%s756_s14 + $0x30] sm:$0xff]  ;;  %v153_v15 = vld [vmem:[%s756_s14 + $0x38] sm:$0xff]  ;;  %s450_s13 = sshll.u32 %s667_s0, 12  ;;  %s356_s15 = sshll.u32 %s806_s29, 4  ;;  %s932_s15 = int_to_ptr.vmem [resolvable:$true] %s356_s15 }
  0x47   : > { %v154_v32 = vld [vmem:[%s756_s14 + $0x40] sm:$0xff]  ;;  %v155_v33 = vld [vmem:[%s756_s14 + $0x48] sm:$0xff]  ;;  %v156_v38 = vld [vmem:[%s756_s14 + $0x50] sm:$0xff]  ;;  %s930_s17 = scalar_lea.hbm %s985_s2, %s450_s13  ;;  %s342_s18 = scalar_lea.sflag [#allocation6], %s750_s7 }
  0x48   : > { %v157_v39 = vld [vmem:[%s756_s14 + $0x58] sm:$0xff]  ;;  %v158_v40 = vld [vmem:[%s756_s14 + $0x60] sm:$0xff]  ;;  %v159_v45 = vld [vmem:[%s756_s14 + $0x68] sm:$0xff]  ;;  %s542_s23 = scalar_lea.vmem %s932_s15, 4096  ;;  %p992_p0 = scmp.ne.s32.totalorder %s989_s30, 0 }
  0x49   : > { %v160_v46 = vld [vmem:[%s756_s14 + $0x70] sm:$0xff]  ;;  %v161_v51 = vld [vmem:[%s756_s14 + $0x78] sm:$0xff]  ;;  %p543_p9 = scmp.ne.s32.totalorder %s932_s15, %s542_s23  ;;  %s616_s25 = smov [#allocation7]  }
  0x4a   : > { %v763_v1 = vstv %s143_s9  ;;  %v765_v2 = vstv %s439_s11  ;;  %s546_s26 = sshll.u32 %s616_s25, 4  ;;  %s547_s26 = int_to_ptr.vmem [resolvable:$false] %s546_s26 }
  0x4b   : > { %v179_v4 = vmul.f32 %v763_v1, %v146_v0  ;;  %v180_v5 = vmul.f32 %v763_v1, %v147_v3  ;;  %v773_v9 = vstv %s440_s12  ;;  %v181_v10 = vmul.f32 %v763_v1, %v148_v6  ;;  %p544_p1 = pnand %p543_p9, %p992_p0  ;;  %s548_s28 = scalar_lea.vmem %s547_s26, 8192 }
  0x4c   : > { %v182_v11 = vmul.f32 %v763_v1, %v149_v7  ;;  %v183_v12 = vmul.f32 %v763_v1, %v150_v8  ;;  %v184_v18 = vmul.f32 %v763_v1, %v151_v13  ;;  %v185_v19 = vmul.f32 %v763_v1, %v152_v14  ;;  %p549_p11 = scmp.lt.s32.totalorder %s932_s15, %s547_s26  ;;  %p550_p13 = scmp.lt.s32.totalorder %s548_s28, %s542_s23 }
  0x4d   : > { %v212_v16 = vadd.f32 %v765_v2, %v179_v4  ;;  %v213_v17 = vadd.f32 %v765_v2, %v180_v5  ;;  %v214_v20 = vadd.f32 %v765_v2, %v181_v10  ;;  %v186_v23 = vmul.f32 %v763_v1, %v153_v15  ;;  %p545_p2 = pneg %p544_p1 }
  0x4e   : > { %v215_v21 = vadd.f32 %v765_v2, %v182_v11  ;;  %v216_v22 = vadd.f32 %v765_v2, %v183_v12  ;;  %v217_v26 = vadd.f32 %v765_v2, %v184_v18  ;;  %v218_v27 = vadd.f32 %v765_v2, %v185_v19  ;;  %v162_v11 = vld [vmem:[%s756_s14 + $0x80] sm:$0xff]  ;;  %v163_v12 = vld [vmem:[%s756_s14 + $0x88] sm:$0xff]  ;;  %v165_v18 = vld [vmem:[%s756_s14 + $0x98] sm:$0xff]  ;;  %p551_p3 = por %p550_p13, %p549_p11 }
  0x4f   : > { %v244_v24 = vmul.f32 %v212_v16, %v146_v0  ;;  %v245_v25 = vmul.f32 %v213_v17, %v147_v3  ;;  %v246_v28 = vmul.f32 %v214_v20, %v148_v6  ;;  %v219_v31 = vadd.f32 %v765_v2, %v186_v23  ;;  %v164_v17 = vld [vmem:[%s756_s14 + $0x90] sm:$0xff]  ;;  %v166_v19 = vld [vmem:[%s756_s14 + $0xa0] sm:$0xff] }
  0x50   : > { %v247_v29 = vmul.f32 %v215_v21, %v149_v7  ;;  %v248_v30 = vmul.f32 %v216_v22, %v150_v8  ;;  %v249_v36 = vmul.f32 %v217_v26, %v151_v13  ;;  %v250_v37 = vmul.f32 %v218_v27, %v152_v14  ;;  %p552_p5 = pnand %p551_p3, %p545_p2 }
  0x51   : > { %v277_v34 = vadd.f32 %v773_v9, %v244_v24  ;;  %v278_v35 = vadd.f32 %v773_v9, %v245_v25  ;;  %v279_v41 = vadd.f32 %v773_v9, %v246_v28  ;;  %v251_v44 = vmul.f32 %v219_v31, %v153_v15  ;;  %v167_v24 = vld [vmem:[%s756_s14 + $0xa8] sm:$0xff]  ;;  %v168_v25 = vld [vmem:[%s756_s14 + $0xb0] sm:$0xff] }
  0x52   : > { %v280_v42 = vadd.f32 %v773_v9, %v247_v29  ;;  %v281_v43 = vadd.f32 %v773_v9, %v248_v30  ;;  %v282_v47 = vadd.f32 %v773_v9, %v249_v36  ;;  %v283_v48 = vadd.f32 %v773_v9, %v250_v37  ;;  %v169_v30 = vld [vmem:[%s756_s14 + $0xb8] sm:$0xff] }
  0x53   : > { %309 = vst [vmem:[%s806_s29] sm:$0xff] %v277_v34  ;;  %310 = vst [vmem:[%s806_s29 + $0x8] sm:$0xff] %v278_v35  ;;  %v187_v49 = vmul.f32 %v763_v1, %v154_v32  ;;  %v188_v50 = vmul.f32 %v763_v1, %v155_v33  ;;  %v284_v52 = vadd.f32 %v773_v9, %v251_v44 }
  0x54   : > { %311 = vst [vmem:[%s806_s29 + $0x10] sm:$0xff] %v279_v41  ;;  %312 = vst [vmem:[%s806_s29 + $0x18] sm:$0xff] %v280_v42  ;;  %v189_v53 = vmul.f32 %v763_v1, %v156_v38  ;;  %v190_v54 = vmul.f32 %v763_v1, %v157_v39  ;;  %v191_v55 = vmul.f32 %v763_v1, %v158_v40 }
  0x55   : > { %313 = vst [vmem:[%s806_s29 + $0x20] sm:$0xff] %v281_v43  ;;  %314 = vst [vmem:[%s806_s29 + $0x28] sm:$0xff] %v282_v47  ;;  %v220_v56 = vadd.f32 %v765_v2, %v187_v49  ;;  %v221_v57 = vadd.f32 %v765_v2, %v188_v50  ;;  %v192_v58 = vmul.f32 %v763_v1, %v159_v45 }
  0x56   : > { %315 = vst [vmem:[%s806_s29 + $0x30] sm:$0xff] %v283_v48  ;;  %v193_v59 = vmul.f32 %v763_v1, %v160_v46  ;;  %316 = vst [vmem:[%s806_s29 + $0x38] sm:$0xff] %v284_v52  ;;  %v222_v60 = vadd.f32 %v765_v2, %v189_v53  ;;  %v223_v61 = vadd.f32 %v765_v2, %v190_v54  ;;  %v171_v52 = vld [vmem:[%s756_s14 + $0xc8] sm:$0xff] }
  0x57   : > { %v224_v62 = vadd.f32 %v765_v2, %v191_v55  ;;  %v194_v63 = vmul.f32 %v763_v1, %v161_v51  ;;  %v252_v0 = vmul.f32 %v220_v56, %v154_v32  ;;  %v253_v3 = vmul.f32 %v221_v57, %v155_v33  ;;  %v172_v57 = vld [vmem:[%s756_s14 + $0xd0] sm:$0xff] }
  0x58   : > { %v225_v4 = vadd.f32 %v765_v2, %v192_v58  ;;  %v226_v5 = vadd.f32 %v765_v2, %v193_v59  ;;  %v254_v6 = vmul.f32 %v222_v60, %v156_v38  ;;  %v255_v7 = vmul.f32 %v223_v61, %v157_v39  ;;  %v173_v58 = vld [vmem:[%s756_s14 + $0xd8] sm:$0xff]  ;;  %v174_v59 = vld [vmem:[%s756_s14 + $0xe0] sm:$0xff] }
  0x59   : > { %v256_v8 = vmul.f32 %v224_v62, %v158_v40  ;;  %v227_v10 = vadd.f32 %v765_v2, %v194_v63  ;;  %v285_v13 = vadd.f32 %v773_v9, %v252_v0  ;;  %v286_v14 = vadd.f32 %v773_v9, %v253_v3  ;;  %v175_v0 = vld [vmem:[%s756_s14 + $0xe8] sm:$0xff]  ;;  %v176_v3 = vld [vmem:[%s756_s14 + $0xf0] sm:$0xff] }
  0x5a   : > { %v257_v15 = vmul.f32 %v225_v4, %v159_v45  ;;  %v258_v16 = vmul.f32 %v226_v5, %v160_v46  ;;  %v287_v20 = vadd.f32 %v773_v9, %v254_v6  ;;  %v288_v21 = vadd.f32 %v773_v9, %v255_v7 }
  0x5b   : > { %v289_v22 = vadd.f32 %v773_v9, %v256_v8  ;;  %v259_v23 = vmul.f32 %v227_v10, %v161_v51  ;;  %317 = vst [vmem:[%s806_s29 + $0x40] sm:$0xff] %v285_v13  ;;  %318 = vst [vmem:[%s806_s29 + $0x48] sm:$0xff] %v286_v14  ;;  %v195_v28 = vmul.f32 %v763_v1, %v162_v11  ;;  %v170_v51 = vld [vmem:[%s756_s14 + $0xc0] sm:$0xff]  ;;  %v177_v8 = vld [vmem:[%s756_s14 + $0xf8] sm:$0xff] }
  0x5c   : > { %v290_v26 = vadd.f32 %v773_v9, %v257_v15  ;;  %v291_v27 = vadd.f32 %v773_v9, %v258_v16  ;;  %v196_v29 = vmul.f32 %v763_v1, %v163_v12  ;;  %319 = vst [vmem:[%s806_s29 + $0x50] sm:$0xff] %v287_v20  ;;  %320 = vst [vmem:[%s806_s29 + $0x58] sm:$0xff] %v288_v21 }
  0x5d   : > { %321 = vst [vmem:[%s806_s29 + $0x60] sm:$0xff] %v289_v22  ;;  %v292_v31 = vadd.f32 %v773_v9, %v259_v23  ;;  %v197_v32 = vmul.f32 %v763_v1, %v164_v17  ;;  %v198_v33 = vmul.f32 %v763_v1, %v165_v18  ;;  %v199_v34 = vmul.f32 %v763_v1, %v166_v19 }
  0x5e   : > { %322 = vst [vmem:[%s806_s29 + $0x68] sm:$0xff] %v290_v26  ;;  %323 = vst [vmem:[%s806_s29 + $0x70] sm:$0xff] %v291_v27  ;;  %v228_v35 = vadd.f32 %v765_v2, %v195_v28  ;;  %v229_v36 = vadd.f32 %v765_v2, %v196_v29  ;;  %v200_v37 = vmul.f32 %v763_v1, %v167_v24 }
  0x5f   : > { %v201_v38 = vmul.f32 %v763_v1, %v168_v25  ;;  %324 = vst [vmem:[%s806_s29 + $0x78] sm:$0xff] %v292_v31  ;;  %v230_v39 = vadd.f32 %v765_v2, %v197_v32  ;;  %v231_v40 = vadd.f32 %v765_v2, %v198_v33  ;;  %v232_v41 = vadd.f32 %v765_v2, %v199_v34 }
  0x60   : > { %v202_v42 = vmul.f32 %v763_v1, %v169_v30  ;;  %v260_v43 = vmul.f32 %v228_v35, %v162_v11  ;;  %v261_v44 = vmul.f32 %v229_v36, %v163_v12  ;;  %v233_v45 = vadd.f32 %v765_v2, %v200_v37 }
  0x61   : > { %v234_v46 = vadd.f32 %v765_v2, %v201_v38  ;;  %v262_v47 = vmul.f32 %v230_v39, %v164_v17  ;;  %v263_v48 = vmul.f32 %v231_v40, %v165_v18  ;;  %v264_v49 = vmul.f32 %v232_v41, %v166_v19 }
  0x62   : > { %v235_v50 = vadd.f32 %v765_v2, %v202_v42  ;;  %v293_v53 = vadd.f32 %v773_v9, %v260_v43  ;;  %v294_v54 = vadd.f32 %v773_v9, %v261_v44  ;;  %v265_v55 = vmul.f32 %v233_v45, %v167_v24 }
  0x63   : > { %v266_v56 = vmul.f32 %v234_v46, %v168_v25  ;;  %v295_v60 = vadd.f32 %v773_v9, %v262_v47  ;;  %v296_v61 = vadd.f32 %v773_v9, %v263_v48  ;;  %v297_v62 = vadd.f32 %v773_v9, %v264_v49 }
  0x64   : > { %v267_v63 = vmul.f32 %v235_v50, %v169_v30  ;;  %325 = vst [vmem:[%s806_s29 + $0x80] sm:$0xff] %v293_v53  ;;  %326 = vst [vmem:[%s806_s29 + $0x88] sm:$0xff] %v294_v54  ;;  %v298_v4 = vadd.f32 %v773_v9, %v265_v55  ;;  %v203_v6 = vmul.f32 %v763_v1, %v170_v51 }
  0x65   : > { %v299_v5 = vadd.f32 %v773_v9, %v266_v56  ;;  %v204_v7 = vmul.f32 %v763_v1, %v171_v52  ;;  %327 = vst [vmem:[%s806_s29 + $0x90] sm:$0xff] %v295_v60  ;;  %328 = vst [vmem:[%s806_s29 + $0x98] sm:$0xff] %v296_v61  ;;  %v205_v11 = vmul.f32 %v763_v1, %v172_v57 }
  0x66   : > { %329 = vst [vmem:[%s806_s29 + $0xa0] sm:$0xff] %v297_v62  ;;  %v300_v10 = vadd.f32 %v773_v9, %v267_v63  ;;  %v206_v12 = vmul.f32 %v763_v1, %v173_v58  ;;  %v207_v13 = vmul.f32 %v763_v1, %v174_v59  ;;  %330 = vst [vmem:[%s806_s29 + $0xa8] sm:$0xff] %v298_v4 }
  0x67   : > { %331 = vst [vmem:[%s806_s29 + $0xb0] sm:$0xff] %v299_v5  ;;  %v236_v14 = vadd.f32 %v765_v2, %v203_v6  ;;  %v237_v15 = vadd.f32 %v765_v2, %v204_v7  ;;  %v208_v16 = vmul.f32 %v763_v1, %v175_v0  ;;  %v209_v17 = vmul.f32 %v763_v1, %v176_v3 }
  0x68   : > { %332 = vst [vmem:[%s806_s29 + $0xb8] sm:$0xff] %v300_v10  ;;  %v238_v18 = vadd.f32 %v765_v2, %v205_v11  ;;  %v239_v19 = vadd.f32 %v765_v2, %v206_v12  ;;  %v240_v20 = vadd.f32 %v765_v2, %v207_v13  ;;  %v210_v21 = vmul.f32 %v763_v1, %v177_v8 }
  0x69   : > { %v268_v22 = vmul.f32 %v236_v14, %v170_v51  ;;  %v269_v23 = vmul.f32 %v237_v15, %v171_v52  ;;  %v241_v24 = vadd.f32 %v765_v2, %v208_v16  ;;  %v242_v25 = vadd.f32 %v765_v2, %v209_v17 }
  0x6a   : > { %v270_v26 = vmul.f32 %v238_v18, %v172_v57  ;;  %v271_v27 = vmul.f32 %v239_v19, %v173_v58  ;;  %v272_v28 = vmul.f32 %v240_v20, %v174_v59  ;;  %v243_v29 = vadd.f32 %v765_v2, %v210_v21 }
  0x6b   : > { %v301_v30 = vadd.f32 %v773_v9, %v268_v22  ;;  %v302_v1 = vadd.f32 %v773_v9, %v269_v23  ;;  %v273_v31 = vmul.f32 %v241_v24, %v175_v0  ;;  %v274_v32 = vmul.f32 %v242_v25, %v176_v3 }
  0x6c   : > { %v303_v33 = vadd.f32 %v773_v9, %v270_v26  ;;  %v304_v34 = vadd.f32 %v773_v9, %v271_v27  ;;  %v305_v2 = vadd.f32 %v773_v9, %v272_v28  ;;  %v275_v35 = vmul.f32 %v243_v29, %v177_v8 }
  0x6d   : > { %333 = vst [vmem:[%s806_s29 + $0xc0] sm:$0xff] %v301_v30  ;;  %334 = vst [vmem:[%s806_s29 + $0xc8] sm:$0xff] %v302_v1  ;;  %v306_v36 = vadd.f32 %v773_v9, %v273_v31  ;;  %v307_v37 = vadd.f32 %v773_v9, %v274_v32 }
  0x6e   : > { %335 = vst [vmem:[%s806_s29 + $0xd0] sm:$0xff] %v303_v33  ;;  %336 = vst [vmem:[%s806_s29 + $0xd8] sm:$0xff] %v304_v34  ;;  %v308_v38 = vadd.f32 %v773_v9, %v275_v35 }
  0x6f   : > { %337 = vst [vmem:[%s806_s29 + $0xe0] sm:$0xff] %v305_v2  ;;  %338 = vst [vmem:[%s806_s29 + $0xe8] sm:$0xff] %v306_v36 }
  0x70   : > { %339 = vst [vmem:[%s806_s29 + $0xf0] sm:$0xff] %v307_v37  ;;  %340 = vst [vmem:[%s806_s29 + $0xf8] sm:$0xff] %v308_v38 }
  0x71   : > { %555 = shalt.err (!%p552_p5)
}
  0x72   : > { %s556_s4 = scalar_lea.hbm %s930_s17, 4096  ;;  %s560_s8 = scalar_lea.hbm %s985_s2, 8192 }
  0x73   : > { %p557_p7 = scmp.ne.s32.totalorder %s930_s17, %s556_s4  ;;  %p561_p12 = scmp.lt.u32.totalorder %s930_s17, %s985_s2 }
  0x74   : > { %p562_p4 = scmp.lt.u32.totalorder %s560_s8, %s556_s4  ;;  %p564_p9 = scmp.lt.u32.totalorder %s556_s4, %s930_s17 }
  0x75   : > { %p558_p8 = pnand %p557_p7, %p992_p0 }
  0x76   : > { %p563_p6 = por %p562_p4, %p561_p12 }
  0x77   : > { %p559_p10 = pneg %p558_p8 }
  0x78   : > { %p565_p1 = por %p564_p9, %p563_p6 }
  0x7a   : > { %p566_p2 = pnand %p565_p1, %p559_p10 }
  0x7c   : > { %569 = shalt.err (!%p566_p2)
}
  0x7d   : > { %s617_s9 = smov 1024   ;;  %s618_s11 = smov 64  }
  0x7e   : > { %453 = dma.vmem_to_hbm [thread:$0]  (%p992_p0), %s932_s15, 4096, %s930_s17, %s342_s18, %s617_s9, %s617_s9, %s618_s11  }
  0x7f PF: > { %s371_s12 = sand.u32 1, %s598_s19   ;;  %p993_p11 = scmp.ne.s32.totalorder %s990_s3, 0 }
  0x80   : > { %p994_p13 = scmp.ge.s32.totalorder %s610_s22, 2  ;;  %s372_s29 = scalar_lea.sflag [#allocation6], %s371_s12 }
  0x82   : > { %p460_p3 = pnand %p994_p13, %p993_p11 }
  0x84   : > { %593 = dma.done.wait (!%p460_p3), %s372_s29, 4096  }
  0x85   : > { %595 = vsyncadd (!%p460_p3), %s372_s29, 4294963200  ;;  %p19_p5 = scmp.ge.s32.totalorder %s671_s24, 4   ;;  %s995_s19 = smov %s602_s20 }
  0x86   : > { %s996_s20 = smov %s606_s21  ;;  %s997_s21 = smov %s683_s27 }
  0x87   : > { %s998_s22 = smov %s671_s24  ;;  %21 = sbr.rel (!%p19_p5) target bundleno = 17 (0x11), region = 69 }
  0x8e   :  { %377 = vsyncpa [#allocation5], 1 }
  0x8f   :  { %379 = vsyncpa [#allocation5 + $0x1], 1 }
  0x90   :  { %380 = vsyncpa [#allocation6], 1 }
  0x91   :  { %382 = vsyncpa [#allocation6 + $0x1], 1 }

</bundles_post_ra>
